<compile_context>
chip_gen: v5e
topology: v5e:2x2
jax: 0.10.0
libtpu: 0.0.40
codegen_flags: <defaults>
</compile_context>

<pallas_src>
import jax
import jax.numpy as jnp
from jax.experimental import pallas as pl
from jax.experimental.pallas import tpu as pltpu


def gcn_layer_kernel(a2_ref, x_ref, w_ref, b_ref, o_ref):
    """One GCN layer row-tile: relu( A2_tile @ (X @ W) + b ).

    a2_ref: (TILE_M, N) bf16/f32   -- precomputed A @ A slab
    x_ref : (N, Fin)    f32        -- full node features (resident, tiny)
    w_ref : (Fin, Fout) f32        -- W^T
    b_ref : (1, Fout)   f32
    o_ref : (TILE_M, Fout) f32
    """
    # Projection first (tiny f32 dot) so the big aggregation sees the narrow
    # projected width; identical math since bias + ReLU come after aggregation.
    proj = jnp.dot(x_ref[...], w_ref[...], preferred_element_type=jnp.float32)
    # Aggregation on the MXU: operands in A^2's dtype (bf16 fast path when the
    # path counts are exactly representable), accumulation in f32.
    agg = jnp.dot(a2_ref[...], proj.astype(a2_ref.dtype),
                  preferred_element_type=jnp.float32)
    o_ref[...] = jnp.maximum(agg + b_ref[...], 0.0).astype(o_ref.dtype)


def _pick_tile_m(n, a2_itemsize, max_slab_bytes=8 << 20):
    """Row-tile height: one (tile_m, N) A^2 buffer <= ~8 MiB so the
    double-buffered pipeline + residents stay well under v7x's 64 MiB VMEM."""
    if n <= 512:
        return n                         # full-height block (== array dim is legal)
    tile = max_slab_bytes // (n * a2_itemsize)
    return max(8, min(512, (tile // 8) * 8))


def gcn_layer(a2, x, w_t, b_row):
    """relu( A2 @ (X @ W^T) + b ) via a row-tiled, megacore-parallel grid."""
    n = a2.shape[0]
    f_in = x.shape[1]
    f_out = w_t.shape[1]
    tile_m = _pick_tile_m(n, jnp.dtype(a2.dtype).itemsize)
    grid = (pl.cdiv(n, tile_m),)
    return pl.pallas_call(
        gcn_layer_kernel,
        out_shape=jax.ShapeDtypeStruct((n, f_out), jnp.float32),
        grid=grid,
        in_specs=[
            pl.BlockSpec((tile_m, n), lambda i: (i, 0)),     # A^2 slab (streamed)
            pl.BlockSpec((n, f_in), lambda i: (0, 0)),       # features (resident)
            pl.BlockSpec((f_in, f_out), lambda i: (0, 0)),   # W^T      (resident)
            pl.BlockSpec((1, f_out), lambda i: (0, 0)),      # bias row (resident)
        ],
        out_specs=pl.BlockSpec((tile_m, f_out), lambda i: (i, 0)),
        compiler_params=pltpu.CompilerParams(
            dimension_semantics=("parallel",),               # 2x on v7x megacore
            vmem_limit_bytes=64 * 1024 * 1024,
        ),
    )(a2, x, w_t, b_row)


def net_forward(a2, features, prepped_params):
    """Net.forward: two stacked GCN layers sharing the precomputed A^2."""
    w1_t, b1, w2_t, b2 = prepped_params
    h = gcn_layer(a2, features, w1_t, b1)    # GCN(4 -> 4, relu)
    y = gcn_layer(a2, h, w2_t, b2)           # GCN(4 -> 2, relu)
    return y


def prepare_graph(adj):
    """One-time graph prep: A^2 = A @ A (path counts), in the fastest exact dtype.

    bf16 represents integers exactly up to 256; for denser graphs fall back to
    f32 (the kernel then runs the aggregation in f32 automatically).
    """
    a = adj.astype(jnp.float32)
    a2 = jnp.dot(a, a)
    if float(jnp.max(a2)) <= 256.0:
        a2 = a2.astype(jnp.bfloat16)
    return a2


def prepare_params(params):
    """One-time prep: W -> W^T (Fin, Fout) f32, bias -> (1, Fout) f32 row."""
    (w1, b1), (w2, b2) = params
    return (w1.T.astype(jnp.float32), b1.reshape(1, -1).astype(jnp.float32),
            w2.T.astype(jnp.float32), b2.reshape(1, -1).astype(jnp.float32))


def init_linear(key, in_feats, out_feats):
    """Deterministic nn.Linear-style init (uniform in +-1/sqrt(in_feats))."""
    kw, kb = jax.random.split(key)
    bound = 1.0 / jnp.sqrt(jnp.float32(in_feats))
    w = jax.random.uniform(kw, (out_feats, in_feats), jnp.float32, -bound, bound)
    b = jax.random.uniform(kb, (out_feats,), jnp.float32, -bound, bound)
    return w, b


def reference_forward(adj, features, params):
    """Pure-JAX mirror of the PyTorch Net.forward for a correctness check."""
    a = adj.astype(jnp.float32)
    h = features
    for w, b in params:
        h = a @ (a @ h)                       # two update_all passes
        h = jax.nn.relu(h @ w.T + b)          # apply_nodes: linear + relu
    return h


if __name__ == "__main__":
    key = jax.random.PRNGKey(0)
    k_feat, k_adj, k_l1, k_l2 = jax.random.split(key, 4)

    N = 8          # number of graph nodes
    IN_FEATS = 4   # Net: GCN(4, 4, relu) -> GCN(4, 2, relu)

    # Node features (N, 4), float32.
    features = jax.random.normal(k_feat, (N, IN_FEATS), jnp.float32)

    # Deterministic directed graph: A[v, u] = 1 iff edge u -> v.
    adj = (jax.random.uniform(k_adj, (N, N)) < 0.4).astype(jnp.float32)

    # Parameters for the two NodeApplyModule linears.
    params = (
        init_linear(k_l1, 4, 4),   # gcn1.apply_mod.linear: Linear(4, 4)
        init_linear(k_l2, 4, 2),   # gcn2.apply_mod.linear: Linear(4, 2)
    )

    # One-time prep (hoisted out of the step): A^2 and transposed weights.
    a2 = prepare_graph(adj)
    prepped = prepare_params(params)

    out = jax.jit(net_forward)(a2, features, prepped)
    out = jax.block_until_ready(out)

    assert out.shape == (N, 2), out.shape
    assert out.dtype == jnp.float32, out.dtype

    # Correctness vs. the f32 reference (bf16 rounding of the projected
    # intermediate costs ~3 decimal digits; adjacency path counts are exact).
    ref = reference_forward(adj, features, params)
    assert jnp.allclose(out, ref, rtol=5e-2, atol=5e-2), (out, ref)

    print("KERNEL_OK")
</pallas_src>

<mosaic_0001>
module attributes {stable_mosaic.version = 11 : i64} {
  func.func @gcn_layer_kernel(%arg0: i32, %arg1: memref<8x8xbf16, #tpu.memory_space<vmem>>, %arg2: memref<8x4xf32, #tpu.memory_space<vmem>>, %arg3: memref<4x2xf32, #tpu.memory_space<vmem>>, %arg4: memref<1x2xf32, #tpu.memory_space<vmem>>, %arg5: memref<8x2xf32, #tpu.memory_space<vmem>>) attributes {dimension_semantics = [#tpu.dimension_semantics<parallel>], iteration_bounds = array<i64: 1>, scalar_prefetch = 0 : i64, scratch_operands = 0 : i64, tpu.core_type = #tpu.core_type<tc>, window_params = [{transform_indices = @transform_0, window_bounds = array<i64: 8, 8>}, {pipeline_mode = #tpu.pipeline_mode<synchronous>, transform_indices = @transform_1, window_bounds = array<i64: 8, 4>}, {pipeline_mode = #tpu.pipeline_mode<synchronous>, transform_indices = @transform_2, window_bounds = array<i64: 4, 2>}, {pipeline_mode = #tpu.pipeline_mode<synchronous>, transform_indices = @transform_3, window_bounds = array<i64: 1, 2>}, {transform_indices = @transform_4, window_bounds = array<i64: 8, 2>}]} {
    %c0 = arith.constant 0 : index
    %c0_0 = arith.constant 0 : index
    %0 = vector.load %arg2[%c0, %c0_0] : memref<8x4xf32, #tpu.memory_space<vmem>>, vector<8x4xf32>
    %c0_1 = arith.constant 0 : index
    %c0_2 = arith.constant 0 : index
    %1 = vector.load %arg3[%c0_1, %c0_2] : memref<4x2xf32, #tpu.memory_space<vmem>>, vector<4x2xf32>
    %cst = arith.constant dense<0.000000e+00> : vector<8x2xf32>
    %2 = tpu.matmul %0, %1, %cst {dimension_numbers = #tpu.dot_dimension_numbers<[1], [0], [0], [1], [0, 0, 1, 1], [], []>} : vector<8x4xf32>, vector<4x2xf32>, vector<8x2xf32> -> vector<8x2xf32>
    %c0_3 = arith.constant 0 : index
    %c0_4 = arith.constant 0 : index
    %3 = vector.load %arg1[%c0_3, %c0_4] : memref<8x8xbf16, #tpu.memory_space<vmem>>, vector<8x8xbf16>
    %4 = arith.truncf %2 : vector<8x2xf32> to vector<8x2xbf16>
    %cst_5 = arith.constant dense<0.000000e+00> : vector<8x2xf32>
    %5 = tpu.matmul %3, %4, %cst_5 {dimension_numbers = #tpu.dot_dimension_numbers<[1], [0], [0], [1], [0, 0, 1, 1], [], []>} : vector<8x8xbf16>, vector<8x2xbf16>, vector<8x2xf32> -> vector<8x2xf32>
    %c0_6 = arith.constant 0 : index
    %c0_7 = arith.constant 0 : index
    %6 = vector.load %arg4[%c0_6, %c0_7] : memref<1x2xf32, #tpu.memory_space<vmem>>, vector<1x2xf32>
    %7 = vector.broadcast %6 : vector<1x2xf32> to vector<8x2xf32>
    %8 = arith.addf %5, %7 : vector<8x2xf32>
    %cst_8 = arith.constant 0.000000e+00 : f32
    %9 = vector.broadcast %cst_8 : f32 to vector<8x2xf32>
    %10 = arith.maximumf %8, %9 : vector<8x2xf32>
    %c0_9 = arith.constant 0 : index
    %c0_10 = arith.constant 0 : index
    %11 = vector.load %arg5[%c0_9, %c0_10] : memref<8x2xf32, #tpu.memory_space<vmem>>, vector<8x2xf32>
    tpu.vector_store %arg5[%c0_9, %c0_10], %10 {strides = array<i32>} : memref<8x2xf32, #tpu.memory_space<vmem>>, vector<8x2xf32>,
    return
  }
  func.func @transform_0(%arg0: i32) -> (i32, i32) {
    %c0_i32 = arith.constant 0 : i32
    %c0_i32_0 = arith.constant 0 : i32
    return %arg0, %c0_i32 : i32, i32
  }
  func.func @transform_1(%arg0: i32) -> (i32, i32) {
    %c0_i32 = arith.constant 0 : i32
    %c0_i32_0 = arith.constant 0 : i32
    %c0_i32_1 = arith.constant 0 : i32
    return %c0_i32, %c0_i32_0 : i32, i32
  }
  func.func @transform_2(%arg0: i32) -> (i32, i32) {
    %c0_i32 = arith.constant 0 : i32
    %c0_i32_0 = arith.constant 0 : i32
    %c0_i32_1 = arith.constant 0 : i32
    return %c0_i32, %c0_i32_0 : i32, i32
  }
  func.func @transform_3(%arg0: i32) -> (i32, i32) {
    %c0_i32 = arith.constant 0 : i32
    %c0_i32_0 = arith.constant 0 : i32
    %c0_i32_1 = arith.constant 0 : i32
    return %c0_i32, %c0_i32_0 : i32, i32
  }
  func.func @transform_4(%arg0: i32) -> (i32, i32) {
    %c0_i32 = arith.constant 0 : i32
    %c0_i32_0 = arith.constant 0 : i32
    return %arg0, %c0_i32 : i32, i32
  }
}

module attributes {stable_mosaic.version = 11 : i64} {
  func.func @gcn_layer_kernel(%arg0: i32, %arg1: memref<8x8xbf16, #tpu.memory_space<vmem>>, %arg2: memref<8x4xf32, #tpu.memory_space<vmem>>, %arg3: memref<4x4xf32, #tpu.memory_space<vmem>>, %arg4: memref<1x4xf32, #tpu.memory_space<vmem>>, %arg5: memref<8x4xf32, #tpu.memory_space<vmem>>) attributes {dimension_semantics = [#tpu.dimension_semantics<parallel>], iteration_bounds = array<i64: 1>, scalar_prefetch = 0 : i64, scratch_operands = 0 : i64, tpu.core_type = #tpu.core_type<tc>, window_params = [{transform_indices = @transform_0, window_bounds = array<i64: 8, 8>}, {pipeline_mode = #tpu.pipeline_mode<synchronous>, transform_indices = @transform_1, window_bounds = array<i64: 8, 4>}, {pipeline_mode = #tpu.pipeline_mode<synchronous>, transform_indices = @transform_2, window_bounds = array<i64: 4, 4>}, {pipeline_mode = #tpu.pipeline_mode<synchronous>, transform_indices = @transform_3, window_bounds = array<i64: 1, 4>}, {transform_indices = @transform_4, window_bounds = array<i64: 8, 4>}]} {
    %c0 = arith.constant 0 : index
    %c0_0 = arith.constant 0 : index
    %0 = vector.load %arg2[%c0, %c0_0] : memref<8x4xf32, #tpu.memory_space<vmem>>, vector<8x4xf32>
    %c0_1 = arith.constant 0 : index
    %c0_2 = arith.constant 0 : index
    %1 = vector.load %arg3[%c0_1, %c0_2] : memref<4x4xf32, #tpu.memory_space<vmem>>, vector<4x4xf32>
    %cst = arith.constant dense<0.000000e+00> : vector<8x4xf32>
    %2 = tpu.matmul %0, %1, %cst {dimension_numbers = #tpu.dot_dimension_numbers<[1], [0], [0], [1], [0, 0, 1, 1], [], []>} : vector<8x4xf32>, vector<4x4xf32>, vector<8x4xf32> -> vector<8x4xf32>
    %c0_3 = arith.constant 0 : index
    %c0_4 = arith.constant 0 : index
    %3 = vector.load %arg1[%c0_3, %c0_4] : memref<8x8xbf16, #tpu.memory_space<vmem>>, vector<8x8xbf16>
    %4 = arith.truncf %2 : vector<8x4xf32> to vector<8x4xbf16>
    %cst_5 = arith.constant dense<0.000000e+00> : vector<8x4xf32>
    %5 = tpu.matmul %3, %4, %cst_5 {dimension_numbers = #tpu.dot_dimension_numbers<[1], [0], [0], [1], [0, 0, 1, 1], [], []>} : vector<8x8xbf16>, vector<8x4xbf16>, vector<8x4xf32> -> vector<8x4xf32>
    %c0_6 = arith.constant 0 : index
    %c0_7 = arith.constant 0 : index
    %6 = vector.load %arg4[%c0_6, %c0_7] : memref<1x4xf32, #tpu.memory_space<vmem>>, vector<1x4xf32>
    %7 = vector.broadcast %6 : vector<1x4xf32> to vector<8x4xf32>
    %8 = arith.addf %5, %7 : vector<8x4xf32>
    %cst_8 = arith.constant 0.000000e+00 : f32
    %9 = vector.broadcast %cst_8 : f32 to vector<8x4xf32>
    %10 = arith.maximumf %8, %9 : vector<8x4xf32>
    %c0_9 = arith.constant 0 : index
    %c0_10 = arith.constant 0 : index
    %11 = vector.load %arg5[%c0_9, %c0_10] : memref<8x4xf32, #tpu.memory_space<vmem>>, vector<8x4xf32>
    tpu.vector_store %arg5[%c0_9, %c0_10], %10 {strides = array<i32>} : memref<8x4xf32, #tpu.memory_space<vmem>>, vector<8x4xf32>,
    return
  }
  func.func @transform_0(%arg0: i32) -> (i32, i32) {
    %c0_i32 = arith.constant 0 : i32
    %c0_i32_0 = arith.constant 0 : i32
    return %arg0, %c0_i32 : i32, i32
  }
  func.func @transform_1(%arg0: i32) -> (i32, i32) {
    %c0_i32 = arith.constant 0 : i32
    %c0_i32_0 = arith.constant 0 : i32
    %c0_i32_1 = arith.constant 0 : i32
    return %c0_i32, %c0_i32_0 : i32, i32
  }
  func.func @transform_2(%arg0: i32) -> (i32, i32) {
    %c0_i32 = arith.constant 0 : i32
    %c0_i32_0 = arith.constant 0 : i32
    %c0_i32_1 = arith.constant 0 : i32
    return %c0_i32, %c0_i32_0 : i32, i32
  }
  func.func @transform_3(%arg0: i32) -> (i32, i32) {
    %c0_i32 = arith.constant 0 : i32
    %c0_i32_0 = arith.constant 0 : i32
    %c0_i32_1 = arith.constant 0 : i32
    return %c0_i32, %c0_i32_0 : i32, i32
  }
  func.func @transform_4(%arg0: i32) -> (i32, i32) {
    %c0_i32 = arith.constant 0 : i32
    %c0_i32_0 = arith.constant 0 : i32
    return %arg0, %c0_i32 : i32, i32
  }
}

</mosaic_0001>

<bundles_post_ra>
// kernel: net_forward.3
= control target key start
LH: loop header
LB: loop body
LE: loop exit
PB: predicated region body
PF: predicated region fallthrough
CT: control target
= control target key end

     0   :  { %vm24_vm0 = vcmask 1043456   ;;  %vm20_vm1 = vcmask 31744   ;;  %vm54_vm2 = vcmask 64512   ;;  %vm75_vm3 = vcmask 15360   ;;  %s125_s2 = inlined_call_operand.vmem [shape: f32[4,2], index: 2, kind: input, shape index: {}]   ;;  %s126_s1 = inlined_call_operand.vmem [shape: f32[8,4], index: 1, kind: input, shape index: {}]   ;;  %s127_s3 = inlined_call_operand.vmem [shape: f32[1,2], index: 3, kind: input, shape index: {}]   ;;  %s128_s0 = inlined_call_operand.vmem [shape: bf16[8,8], index: 0, kind: input, shape index: {}]   ;;  %s129_s4 = inlined_call_operand.vmem [shape: f32[8,2], index: 4, kind: output, shape index: {}]  }
   0x1   :  { %v19_v0 = vld [vmem:[%s125_s2] sm:$0xf] }
   0x2   :  { %v18_v1 = vld [vmem:[%s126_s1] sm:$0xff]  ;;  %81 = vmatpush.msk.msra.mxu0 %vm24_vm0, %v19_v0 }
   0x3   :  { %82 = vmatmul.msk.f32.vlgmr.msra.gmra.mxu0 %vm20_vm1, %v18_v1  ;;  %v48_v5 = vld [vmem:[%s128_s0] sm:$0xf] }
   0x4   :  { %v84_v6 = vld [vmem:[%s127_s3] ss:$0 sm:$0xff] }
  0x80   :  { %v45_v2 = vpop.f32.mrf.mxu0 }
  0x81   :  { %v49_v3 = vpack.c.bf16 %v45_v2, %v45_v2 }
  0x83   :  { %v59_v4 = vsel %vm24_vm0, %v49_v3, 0 }
  0x84   :  { %68 = vmatpush.bf16.msra.mxu1 %v59_v4 }
  0x87   :  { %83 = vmatmul.msk.bf16.vlgmr.msra.gmra.mxu1 %vm54_vm2, %v48_v5 }
 0x104   :  { %v70_v7 = vpop.f32.mrf.mxu1 }
 0x105   :  { %v71_v8 = vadd.f32 %v84_v6, %v70_v7 }
 0x107   :  { %v74_v9 = vmax.f32 %v71_v8, 0.0 }
 0x109   :  { %76 = vst.msk [vmem:[%s129_s4] sm:$0xff] %vm75_vm3, %v74_v9 }
 0x10c   :  { %v72_v10 = vpop.f32.mrf.mxu1 }

// kernel: net_forward.2
= control target key start
LH: loop header
LB: loop body
LE: loop exit
PB: predicated region body
PF: predicated region fallthrough
CT: control target
= control target key end

     0   :  { %vm24_vm0 = vcmask 1043456   ;;  %vm20_vm1 = vcmask 31744   ;;  %vm54_vm2 = vcmask 64512   ;;  %s126_s2 = inlined_call_operand.vmem [shape: f32[4,4], index: 2, kind: input, shape index: {}]   ;;  %s127_s1 = inlined_call_operand.vmem [shape: f32[8,4], index: 1, kind: input, shape index: {}]   ;;  %s128_s3 = inlined_call_operand.vmem [shape: f32[1,4], index: 3, kind: input, shape index: {}]   ;;  %s129_s0 = inlined_call_operand.vmem [shape: bf16[8,8], index: 0, kind: input, shape index: {}]   ;;  %s130_s4 = inlined_call_operand.vmem [shape: f32[8,4], index: 4, kind: output, shape index: {}]  }
   0x1   :  { %v19_v0 = vld [vmem:[%s126_s2] sm:$0xf] }
   0x2   :  { %v18_v1 = vld [vmem:[%s127_s1] sm:$0xff]  ;;  %80 = vmatpush.msk.msra.mxu0 %vm24_vm0, %v19_v0 }
   0x3   :  { %81 = vmatmul.msk.f32.vlgmr.msra.gmra.mxu0 %vm20_vm1, %v18_v1  ;;  %v48_v5 = vld [vmem:[%s129_s0] sm:$0xf] }
   0x4   :  { %v83_v6 = vld [vmem:[%s128_s3] ss:$0 sm:$0xff] }
  0x80   :  { %v45_v2 = vpop.f32.mrf.mxu0 }
  0x81   :  { %v49_v3 = vpack.c.bf16 %v45_v2, %v45_v2 }
  0x83   :  { %v59_v4 = vsel %vm24_vm0, %v49_v3, 0 }
  0x84   :  { %68 = vmatpush.bf16.msra.mxu1 %v59_v4 }
  0x87   :  { %82 = vmatmul.msk.bf16.vlgmr.msra.gmra.mxu1 %vm54_vm2, %v48_v5 }
 0x104   :  { %v70_v7 = vpop.f32.mrf.mxu1 }
 0x105   :  { %v71_v8 = vadd.f32 %v83_v6, %v70_v7 }
 0x107   :  { %v74_v9 = vmax.f32 %v71_v8, 0.0 }
 0x109   :  { %75 = vst.msk [vmem:[%s130_s4] sm:$0xff] %vm20_vm1, %v74_v9 }
 0x10c   :  { %v72_v10 = vpop.f32.mrf.mxu1 }

</bundles_post_ra>
